<compile_context>
chip_gen: v5e
topology: v5e:2x2
jax: 0.10.0
libtpu: 0.0.40
codegen_flags: <defaults>
</compile_context>

<pallas_src>
from functools import partial

import jax
import jax.numpy as jnp
import numpy as np
from jax.experimental import pallas as pl
from jax.experimental.pallas import tpu as pltpu

DIM_WARP = 32
GN_EPS = 1e-5  # torch GroupNorm default


def round_up(x, m):
    return (x + m - 1) // m * m


# --------------------------------------------------------------------------- #
# Kernel
# --------------------------------------------------------------------------- #
def metablock_kernel(x_ref, res_ref, sb_ref, w_pre_ref, *rest,
                     wa_pad, mxu_dtype, fused_stats):
    if fused_stats:
        avg_ref, w_gv_ref, w_post_ref, out_ref = rest
    else:
        avg_in_ref, bcast_ref, w_gv_ref, w_post_ref, out_ref = rest

    f32 = jnp.float32
    x = x_ref[...].astype(f32)
    res = res_ref[...].astype(f32)

    # Packed scale/bias block: rows 0..3 = s0, b0, s1, b1.
    sb = sb_ref[...]
    s0, b0, s1, b1 = sb[0:1], sb[1:2], sb[2:3], sb[3:4]

    # xx0 = mix0(x) + res
    xx0 = s0 * x + b0 + res

    # pre: DenseLayer (1x1 conv == matmul)
    xn = jnp.dot(xx0.astype(mxu_dtype), w_pre_ref[...], preferred_element_type=f32)

    # GroupNorm(nhead, width_norm, affine=False) — statistics via group-average
    # matmuls (kept f32). Two dots sharing the same RHS (no concat copy).
    xn2 = xn * xn
    if fused_stats:
        mean = jnp.dot(xn, avg_ref[...], preferred_element_type=f32)
        meansq = jnp.dot(xn2, avg_ref[...], preferred_element_type=f32)
    else:
        m_small = jnp.dot(xn, avg_in_ref[...], preferred_element_type=f32)
        s_small = jnp.dot(xn2, avg_in_ref[...], preferred_element_type=f32)
        mean = jnp.dot(m_small, bcast_ref[...], preferred_element_type=f32)
        meansq = jnp.dot(s_small, bcast_ref[...], preferred_element_type=f32)

    var = jnp.maximum(meansq - mean * mean, 0.0)  # guard cancellation
    # Padded channels/rows: xn == 0 -> mean == 0, var == 0 -> xng == 0 (benign).
    xng = (xn - mean) * jax.lax.rsqrt(var + GN_EPS)

    # fused gate|value grouped dense (single MXU pass), ReLU gating.
    # (dropout is identity in eval mode)
    gv = jnp.dot(xng.astype(mxu_dtype), w_gv_ref[...], preferred_element_type=f32)
    gate = jnp.maximum(gv[:, :wa_pad], 0.0)
    val = gv[:, wa_pad:]

    # post dense
    ff = jnp.dot((gate * val).astype(mxu_dtype), w_post_ref[...],
                 preferred_element_type=f32)

    # out = mix1(xx0) + ffn(xx0)
    out_ref[...] = (s1 * xx0 + b1 + ff).astype(out_ref.dtype)


# --------------------------------------------------------------------------- #
# Parameter construction / packing
# --------------------------------------------------------------------------- #
def make_params(key, width, nhead, resca_norm=1, resca_act=1):
    """Logical (unpadded) parameters mirroring the PyTorch module."""
    WN = DIM_WARP * nhead * resca_norm
    WA = DIM_WARP * nhead * resca_act
    Gi, Go = WN // nhead, WA // nhead
    ks = jax.random.split(key, 8)

    # ScaleLayer params (torch init is ones/zeros; perturb deterministically).
    s0 = 1.0 + 0.1 * jax.random.normal(ks[0], (width,), jnp.float32)
    b0 = 0.1 * jax.random.normal(ks[1], (width,), jnp.float32)
    s1 = 1.0 + 0.1 * jax.random.normal(ks[2], (width,), jnp.float32)
    b1 = 0.1 * jax.random.normal(ks[3], (width,), jnp.float32)

    # Dense (1x1 conv) weights as (C_in, C_out) == torch weight[:, :, 0].T
    w_pre = 0.2 * jax.random.normal(ks[4], (width, WN), jnp.float32)
    w_post = 0.2 * jax.random.normal(ks[5], (WA, width), jnp.float32)

    # Grouped conv weights: per-head (Gi, Go) blocks.
    gate_blocks = 0.2 * jax.random.normal(ks[6], (nhead, Gi, Go), jnp.float32)
    val_blocks = 0.2 * jax.random.normal(ks[7], (nhead, Gi, Go), jnp.float32)

    return dict(s0=s0, b0=b0, s1=s1, b1=b1, w_pre=w_pre, w_post=w_post,
                gate_blocks=gate_blocks, val_blocks=val_blocks,
                nhead=nhead, WN=WN, WA=WA, width=width)


def pack_params(params, mxu_dtype=jnp.float32):
    """Pad everything lane-dense (multiples of 128), fuse gate|value weights,
    pack scale/bias rows, and build the GroupNorm averaging matrices."""
    nhead = params["nhead"]
    W, WN, WA = params["width"], params["WN"], params["WA"]
    Gi, Go = WN // nhead, WA // nhead
    Wp, WNp, WAp = round_up(W, 128), round_up(WN, 128), round_up(WA, 128)
    fused_stats = WNp <= 256  # single (WNp,WNp) averaging pass when cheap

    def pad2(a, r, c):
        return jnp.pad(a, ((0, r - a.shape[0]), (0, c - a.shape[1])))

    def block_diag(blocks, rows, cols):
        out = jnp.zeros((nhead * rows, nhead * cols), jnp.float32)
        for h in range(nhead):
            out = out.at[h * rows:(h + 1) * rows,
                         h * cols:(h + 1) * cols].set(blocks[h])
        return out

    w_gate_bd = block_diag(params["gate_blocks"], Gi, Go)
    w_val_bd = block_diag(params["val_blocks"], Gi, Go)
    w_gv = jnp.concatenate([pad2(w_gate_bd, WNp, WAp),
                            pad2(w_val_bd, WNp, WAp)], axis=1)   # (WNp, 2*WAp)

    # Pack ScaleLayer params into one (8, Wp) block: rows 0..3 = s0, b0, s1, b1.
    sb = jnp.zeros((8, Wp), jnp.float32)
    sb = sb.at[0, :W].set(params["s0"])
    sb = sb.at[1, :W].set(params["b0"])
    sb = sb.at[2, :W].set(params["s1"])
    sb = sb.at[3, :W].set(params["b1"])

    gidx = jnp.arange(WN) // Gi
    arrays = dict(
        sb=sb,
        w_pre=pad2(params["w_pre"], Wp, WNp).astype(mxu_dtype),
        w_gv=w_gv.astype(mxu_dtype),
        w_post=pad2(params["w_post"], WAp, Wp).astype(mxu_dtype),
    )
    meta = dict(W=W, WN=WN, WA=WA, Wp=Wp, WNp=WNp, WAp=WAp, NHp=None,
                nhead=nhead, mxu_dtype=mxu_dtype, fused_stats=fused_stats)

    if fused_stats:
        # Block-diagonal average+broadcast in one matrix (stats stay f32).
        avg_full = (gidx[:, None] == gidx[None, :]).astype(jnp.float32) / Gi
        arrays["avg"] = pad2(avg_full, WNp, WNp)
    else:
        NHp = round_up(nhead, 128)
        avg_in = (gidx[:, None] == jnp.arange(nhead)[None, :]).astype(jnp.float32) / Gi
        bcast = (jnp.arange(nhead)[:, None] == gidx[None, :]).astype(jnp.float32)
        arrays["avg_in"] = pad2(avg_in, WNp, NHp)
        arrays["bcast"] = pad2(bcast, NHp, WNp)
        meta["NHp"] = NHp
    return arrays, meta


# --------------------------------------------------------------------------- #
# Wrapper
# --------------------------------------------------------------------------- #
def _physical_vmem_bytes():
    try:
        info = pltpu.get_tpu_info()
        for attr in ("vmem_capacity_bytes", "vmem_size_bytes", "vmem_bytes"):
            v = getattr(info, attr, None)
            if v:
                return int(v)
    except Exception:
        pass
    return 64 << 20  # conservative default: v7x per-TC VMEM


def metablock_forward(x, res, arrays, meta, *, tile_b=None):
    B, W = x.shape
    assert W == meta["W"] and res.shape == x.shape
    Wp, WNp, WAp = meta["Wp"], meta["WNp"], meta["WAp"]
    fused_stats = meta["fused_stats"]
    act_isz = jnp.dtype(x.dtype).itemsize

    weight_bytes = sum(int(a.size) * a.dtype.itemsize for a in arrays.values())

    # Chip-aware VMEM budget: leave ~16 MiB headroom for compiler scratch/spill.
    phys_vmem = _physical_vmem_bytes()
    vmem_budget = max(phys_vmem - (16 << 20), 32 << 20)     # ~48 MiB v7x, ~112 MiB v5e/v6e
    tb_cap = 512 if phys_vmem >= (96 << 20) else 256

    Bp8 = round_up(B, 8)

    def vmem_estimate(tb):
        # weights single-buffered (pl.Buffered(1)); x/res/out double-buffered.
        act = 2 * tb * Wp * act_isz * 2
        out = tb * Wp * act_isz * 2
        interm = tb * (6 * WNp + 4 * WAp + 3 * Wp) * 4      # in-kernel f32 temporaries
        return weight_bytes + act + out + interm

    if tile_b is not None:
        TB = int(tile_b)
    else:
        cands = [tb for tb in (512, 256, 128, 64, 32, 16, 8) if tb <= tb_cap]
        feas = [tb for tb in cands if vmem_estimate(tb) <= vmem_budget] or [8]

        def score(tb):  # padded rows, mildly penalizing per-step overhead
            bp = round_up(Bp8, tb)
            return bp * (1.0 + 0.02 * (bp // tb))

        TB = min(feas, key=lambda tb: (score(tb), -tb))
        # v7x megacore: prefer >= 2 grid steps when it costs no extra padding.
        bp = round_up(Bp8, TB)
        if bp // TB == 1 and TB >= 16 and (TB // 2) % 8 == 0 and round_up(Bp8, TB // 2) == bp:
            TB //= 2
    Bp = round_up(Bp8, TB)

    need_pad = (Bp != B) or (Wp != W)
    if need_pad:
        xp = jnp.pad(x, ((0, Bp - B), (0, Wp - W)))
        rp = jnp.pad(res, ((0, Bp - B), (0, Wp - W)))
    else:
        xp, rp = x, res

    # FLOP / bytes hints for the XLA scheduler.
    flops = Bp * (2 * Wp * WNp + 4 * WNp * WAp + 2 * WAp * Wp)
    if fused_stats:
        flops += Bp * 4 * WNp * WNp
        stat_shapes = [(WNp, WNp)]
        stat_arrays = [arrays["avg"]]
    else:
        NHp = meta["NHp"]
        flops += Bp * 8 * WNp * NHp
        stat_shapes = [(WNp, NHp), (NHp, WNp)]
        stat_arrays = [arrays["avg_in"], arrays["bcast"]]

    cost = pl.CostEstimate(
        flops=int(flops),
        transcendentals=int(Bp * WNp),
        bytes_accessed=int(3 * Bp * Wp * act_isz + weight_bytes))

    vmem_limit = int(min(max(int(1.25 * vmem_estimate(TB)), 16 << 20), vmem_budget))

    kernel = partial(metablock_kernel, wa_pad=WAp, mxu_dtype=meta["mxu_dtype"],
                     fused_stats=fused_stats)
    out_shape = jax.ShapeDtypeStruct((Bp, Wp), x.dtype)
    row_spec = pl.BlockSpec((TB, Wp), lambda i: (i, 0))

    def run(single_buffer_consts):
        kw = dict(pipeline_mode=pl.Buffered(1)) if single_buffer_consts else {}

        def const(shape):
            return pl.BlockSpec(shape, lambda i: (0, 0), **kw)

        in_specs = ([row_spec,                  # x tile
                     row_spec,                  # res tile
                     const((8, Wp)),            # packed s0/b0/s1/b1
                     const((Wp, WNp))]          # w_pre
                    + [const(s) for s in stat_shapes]   # GroupNorm averaging
                    + [const((WNp, 2 * WAp)),   # fused w_gate|w_value (block-diag)
                       const((WAp, Wp))])       # w_post
        out = pl.pallas_call(
            kernel,
            out_shape=out_shape,
            grid=(Bp // TB,),
            in_specs=in_specs,
            out_specs=row_spec,
            compiler_params=pltpu.CompilerParams(
                dimension_semantics=("parallel",),
                vmem_limit_bytes=vmem_limit),
            cost_estimate=cost,
        )(xp, rp, arrays["sb"], arrays["w_pre"], *stat_arrays,
          arrays["w_gv"], arrays["w_post"])
        return jax.block_until_ready(out)

    try:
        out = run(True)     # single-buffer the grid-invariant weights/scales
    except Exception:
        out = run(False)    # fallback if this JAX build rejects pipeline_mode

    return out[:B, :W] if need_pad else out


# --------------------------------------------------------------------------- #
# Plain-JAX reference (mirrors the PyTorch module in eval mode)
# --------------------------------------------------------------------------- #
def metablock_reference(x, res, params):
    B, W = x.shape
    nhead, WN, WA = params["nhead"], params["WN"], params["WA"]
    Gi = WN // nhead
    xx0 = params["s0"] * x + params["b0"] + res
    xn = xx0 @ params["w_pre"]
    g = xn.reshape(B, nhead, Gi)
    mean = g.mean(-1, keepdims=True)
    var = g.var(-1, keepdims=True)  # biased, as in torch GroupNorm
    xng = (g - mean) / jnp.sqrt(var + GN_EPS)
    gate = jnp.maximum(jnp.einsum("bhg,hgo->bho", xng, params["gate_blocks"]), 0.0)
    val = jnp.einsum("bhg,hgo->bho", xng, params["val_blocks"])
    ff = (gate * val).reshape(B, WA) @ params["w_post"]
    return params["s1"] * xx0 + params["b1"] + ff


if __name__ == "__main__":
    width, nhead, batch = 32, 2, 8
    key = jax.random.PRNGKey(0)
    k_p, k_x, k_r = jax.random.split(key, 3)

    params = make_params(k_p, width, nhead)
    x = jax.random.normal(k_x, (batch, width), jnp.float32)
    res = jax.random.normal(k_r, (batch, width), jnp.float32)

    ref = metablock_reference(x, res, params)

    # f32 MXU path (default TPU dot precision; matches reference to ~1e-5 rel).
    arrays32, meta32 = pack_params(params, mxu_dtype=jnp.float32)
    out32 = jax.block_until_ready(metablock_forward(x, res, arrays32, meta32))
    np.testing.assert_allclose(np.asarray(out32), np.asarray(ref),
                               rtol=1e-4, atol=1e-4)

    # bf16 MXU path (fast path, recommended default on v5e) — looser tolerance.
    arraysbf, metabf = pack_params(params, mxu_dtype=jnp.bfloat16)
    outbf = jax.block_until_ready(metablock_forward(x, res, arraysbf, metabf))
    np.testing.assert_allclose(np.asarray(outbf), np.asarray(ref),
                               rtol=1e-1, atol=1e-1)

    print("KERNEL_OK")
</pallas_src>

<mosaic_0001>
module attributes {stable_mosaic.version = 11 : i64} {
  func.func @metablock_kernel(%arg0: i32, %arg1: memref<8x128xf32, #tpu.memory_space<vmem>>, %arg2: memref<8x128xf32, #tpu.memory_space<vmem>>, %arg3: memref<8x128xf32, #tpu.memory_space<vmem>>, %arg4: memref<128x128xf32, #tpu.memory_space<vmem>>, %arg5: memref<128x128xf32, #tpu.memory_space<vmem>>, %arg6: memref<128x256xf32, #tpu.memory_space<vmem>>, %arg7: memref<128x128xf32, #tpu.memory_space<vmem>>, %arg8: memref<8x128xf32, #tpu.memory_space<vmem>>) attributes {dimension_semantics = [#tpu.dimension_semantics<parallel>], iteration_bounds = array<i64: 1>, scalar_prefetch = 0 : i64, scratch_operands = 0 : i64, tpu.core_type = #tpu.core_type<tc>, window_params = [{transform_indices = @transform_0, window_bounds = array<i64: 8, 128>}, {transform_indices = @transform_1, window_bounds = array<i64: 8, 128>}, {pipeline_mode = #tpu.pipeline_mode<synchronous>, transform_indices = @transform_2, window_bounds = array<i64: 8, 128>}, {pipeline_mode = #tpu.pipeline_mode<synchronous>, transform_indices = @transform_3, window_bounds = array<i64: 128, 128>}, {pipeline_mode = #tpu.pipeline_mode<synchronous>, transform_indices = @transform_4, window_bounds = array<i64: 128, 128>}, {pipeline_mode = #tpu.pipeline_mode<synchronous>, transform_indices = @transform_5, window_bounds = array<i64: 128, 256>}, {pipeline_mode = #tpu.pipeline_mode<synchronous>, transform_indices = @transform_6, window_bounds = array<i64: 128, 128>}, {transform_indices = @transform_7, window_bounds = array<i64: 8, 128>}]} {
    %c0 = arith.constant 0 : index
    %c0_0 = arith.constant 0 : index
    %0 = vector.load %arg1[%c0, %c0_0] : memref<8x128xf32, #tpu.memory_space<vmem>>, vector<8x128xf32>
    %c0_1 = arith.constant 0 : index
    %c0_2 = arith.constant 0 : index
    %1 = vector.load %arg2[%c0_1, %c0_2] : memref<8x128xf32, #tpu.memory_space<vmem>>, vector<8x128xf32>
    %c0_3 = arith.constant 0 : index
    %c0_4 = arith.constant 0 : index
    %2 = vector.load %arg3[%c0_3, %c0_4] : memref<8x128xf32, #tpu.memory_space<vmem>>, vector<8x128xf32>
    %3 = vector.extract_strided_slice %2 {offsets = [0, 0], sizes = [1, 128], strides = [1, 1]} : vector<8x128xf32> to vector<1x128xf32>
    %4 = vector.extract_strided_slice %2 {offsets = [1, 0], sizes = [1, 128], strides = [1, 1]} : vector<8x128xf32> to vector<1x128xf32>
    %5 = vector.extract_strided_slice %2 {offsets = [2, 0], sizes = [1, 128], strides = [1, 1]} : vector<8x128xf32> to vector<1x128xf32>
    %6 = vector.extract_strided_slice %2 {offsets = [3, 0], sizes = [1, 128], strides = [1, 1]} : vector<8x128xf32> to vector<1x128xf32>
    %7 = vector.broadcast %3 : vector<1x128xf32> to vector<8x128xf32>
    %8 = arith.mulf %7, %0 : vector<8x128xf32>
    %9 = vector.broadcast %4 : vector<1x128xf32> to vector<8x128xf32>
    %10 = arith.addf %8, %9 : vector<8x128xf32>
    %11 = arith.addf %10, %1 : vector<8x128xf32>
    %c0_5 = arith.constant 0 : index
    %c0_6 = arith.constant 0 : index
    %12 = vector.load %arg4[%c0_5, %c0_6] : memref<128x128xf32, #tpu.memory_space<vmem>>, vector<128x128xf32>
    %cst = arith.constant dense<0.000000e+00> : vector<8x128xf32>
    %13 = tpu.matmul %11, %12, %cst {dimension_numbers = #tpu.dot_dimension_numbers<[1], [0], [0], [1], [0, 0, 1, 1], [], []>} : vector<8x128xf32>, vector<128x128xf32>, vector<8x128xf32> -> vector<8x128xf32>
    %14 = arith.mulf %13, %13 : vector<8x128xf32>
    %c0_7 = arith.constant 0 : index
    %c0_8 = arith.constant 0 : index
    %15 = vector.load %arg5[%c0_7, %c0_8] : memref<128x128xf32, #tpu.memory_space<vmem>>, vector<128x128xf32>
    %cst_9 = arith.constant dense<0.000000e+00> : vector<8x128xf32>
    %16 = tpu.matmul %13, %15, %cst_9 {dimension_numbers = #tpu.dot_dimension_numbers<[1], [0], [0], [1], [0, 0, 1, 1], [], []>} : vector<8x128xf32>, vector<128x128xf32>, vector<8x128xf32> -> vector<8x128xf32>
    %c0_10 = arith.constant 0 : index
    %c0_11 = arith.constant 0 : index
    %17 = vector.load %arg5[%c0_10, %c0_11] : memref<128x128xf32, #tpu.memory_space<vmem>>, vector<128x128xf32>
    %cst_12 = arith.constant dense<0.000000e+00> : vector<8x128xf32>
    %18 = tpu.matmul %14, %17, %cst_12 {dimension_numbers = #tpu.dot_dimension_numbers<[1], [0], [0], [1], [0, 0, 1, 1], [], []>} : vector<8x128xf32>, vector<128x128xf32>, vector<8x128xf32> -> vector<8x128xf32>
    %19 = arith.mulf %16, %16 : vector<8x128xf32>
    %20 = arith.subf %18, %19 : vector<8x128xf32>
    %cst_13 = arith.constant 0.000000e+00 : f32
    %21 = vector.broadcast %cst_13 : f32 to vector<8x128xf32>
    %22 = arith.maximumf %20, %21 : vector<8x128xf32>
    %23 = arith.subf %13, %16 : vector<8x128xf32>
    %cst_14 = arith.constant 9.99999974E-6 : f32
    %24 = vector.broadcast %cst_14 : f32 to vector<8x128xf32>
    %25 = arith.addf %22, %24 : vector<8x128xf32>
    %26 = math.rsqrt %25 : vector<8x128xf32>
    %27 = arith.mulf %23, %26 : vector<8x128xf32>
    %c0_15 = arith.constant 0 : index
    %c0_16 = arith.constant 0 : index
    %28 = vector.load %arg6[%c0_15, %c0_16] : memref<128x256xf32, #tpu.memory_space<vmem>>, vector<128x256xf32>
    %cst_17 = arith.constant dense<0.000000e+00> : vector<8x256xf32>
    %29 = tpu.matmul %27, %28, %cst_17 {dimension_numbers = #tpu.dot_dimension_numbers<[1], [0], [0], [1], [0, 0, 1, 1], [], []>} : vector<8x128xf32>, vector<128x256xf32>, vector<8x256xf32> -> vector<8x256xf32>
    %30 = vector.extract_strided_slice %29 {offsets = [0, 0], sizes = [8, 128], strides = [1, 1]} : vector<8x256xf32> to vector<8x128xf32>
    %cst_18 = arith.constant 0.000000e+00 : f32
    %31 = vector.broadcast %cst_18 : f32 to vector<8x128xf32>
    %32 = arith.maximumf %30, %31 : vector<8x128xf32>
    %33 = vector.extract_strided_slice %29 {offsets = [0, 128], sizes = [8, 128], strides = [1, 1]} : vector<8x256xf32> to vector<8x128xf32>
    %34 = arith.mulf %32, %33 : vector<8x128xf32>
    %c0_19 = arith.constant 0 : index
    %c0_20 = arith.constant 0 : index
    %35 = vector.load %arg7[%c0_19, %c0_20] : memref<128x128xf32, #tpu.memory_space<vmem>>, vector<128x128xf32>
    %cst_21 = arith.constant dense<0.000000e+00> : vector<8x128xf32>
    %36 = tpu.matmul %34, %35, %cst_21 {dimension_numbers = #tpu.dot_dimension_numbers<[1], [0], [0], [1], [0, 0, 1, 1], [], []>} : vector<8x128xf32>, vector<128x128xf32>, vector<8x128xf32> -> vector<8x128xf32>
    %37 = vector.broadcast %5 : vector<1x128xf32> to vector<8x128xf32>
    %38 = arith.mulf %37, %11 : vector<8x128xf32>
    %39 = vector.broadcast %6 : vector<1x128xf32> to vector<8x128xf32>
    %40 = arith.addf %38, %39 : vector<8x128xf32>
    %41 = arith.addf %40, %36 : vector<8x128xf32>
    %c0_22 = arith.constant 0 : index
    %c0_23 = arith.constant 0 : index
    %42 = vector.load %arg8[%c0_22, %c0_23] : memref<8x128xf32, #tpu.memory_space<vmem>>, vector<8x128xf32>
    tpu.vector_store %arg8[%c0_22, %c0_23], %41 {strides = array<i32>} : memref<8x128xf32, #tpu.memory_space<vmem>>, vector<8x128xf32>,
    return
  }
  func.func @transform_0(%arg0: i32) -> (i32, i32) {
    %c0_i32 = arith.constant 0 : i32
    %c0_i32_0 = arith.constant 0 : i32
    return %arg0, %c0_i32 : i32, i32
  }
  func.func @transform_1(%arg0: i32) -> (i32, i32) {
    %c0_i32 = arith.constant 0 : i32
    %c0_i32_0 = arith.constant 0 : i32
    return %arg0, %c0_i32 : i32, i32
  }
  func.func @transform_2(%arg0: i32) -> (i32, i32) {
    %c0_i32 = arith.constant 0 : i32
    %c0_i32_0 = arith.constant 0 : i32
    %c0_i32_1 = arith.constant 0 : i32
    return %c0_i32, %c0_i32_0 : i32, i32
  }
  func.func @transform_3(%arg0: i32) -> (i32, i32) {
    %c0_i32 = arith.constant 0 : i32
    %c0_i32_0 = arith.constant 0 : i32
    %c0_i32_1 = arith.constant 0 : i32
    return %c0_i32, %c0_i32_0 : i32, i32
  }
  func.func @transform_4(%arg0: i32) -> (i32, i32) {
    %c0_i32 = arith.constant 0 : i32
    %c0_i32_0 = arith.constant 0 : i32
    %c0_i32_1 = arith.constant 0 : i32
    return %c0_i32, %c0_i32_0 : i32, i32
  }
  func.func @transform_5(%arg0: i32) -> (i32, i32) {
    %c0_i32 = arith.constant 0 : i32
    %c0_i32_0 = arith.constant 0 : i32
    %c0_i32_1 = arith.constant 0 : i32
    return %c0_i32, %c0_i32_0 : i32, i32
  }
  func.func @transform_6(%arg0: i32) -> (i32, i32) {
    %c0_i32 = arith.constant 0 : i32
    %c0_i32_0 = arith.constant 0 : i32
    %c0_i32_1 = arith.constant 0 : i32
    return %c0_i32, %c0_i32_0 : i32, i32
  }
  func.func @transform_7(%arg0: i32) -> (i32, i32) {
    %c0_i32 = arith.constant 0 : i32
    %c0_i32_0 = arith.constant 0 : i32
    return %arg0, %c0_i32 : i32, i32
  }
}

module attributes {stable_mosaic.version = 11 : i64} {
  func.func @metablock_kernel(%arg0: i32, %arg1: memref<8x128xf32, #tpu.memory_space<vmem>>, %arg2: memref<8x128xf32, #tpu.memory_space<vmem>>, %arg3: memref<8x128xf32, #tpu.memory_space<vmem>>, %arg4: memref<128x128xf32, #tpu.memory_space<vmem>>, %arg5: memref<128x128xf32, #tpu.memory_space<vmem>>, %arg6: memref<128x256xf32, #tpu.memory_space<vmem>>, %arg7: memref<128x128xf32, #tpu.memory_space<vmem>>, %arg8: memref<8x128xf32, #tpu.memory_space<vmem>>) attributes {dimension_semantics = [#tpu.dimension_semantics<parallel>], iteration_bounds = array<i64: 1>, scalar_prefetch = 0 : i64, scratch_operands = 0 : i64, tpu.core_type = #tpu.core_type<tc>, window_params = [{transform_indices = @transform_0, window_bounds = array<i64: 8, 128>}, {transform_indices = @transform_1, window_bounds = array<i64: 8, 128>}, {pipeline_mode = #tpu.pipeline_mode<synchronous>, transform_indices = @transform_2, window_bounds = array<i64: 8, 128>}, {pipeline_mode = #tpu.pipeline_mode<synchronous>, transform_indices = @transform_3, window_bounds = array<i64: 128, 128>}, {pipeline_mode = #tpu.pipeline_mode<synchronous>, transform_indices = @transform_4, window_bounds = array<i64: 128, 128>}, {pipeline_mode = #tpu.pipeline_mode<synchronous>, transform_indices = @transform_5, window_bounds = array<i64: 128, 256>}, {pipeline_mode = #tpu.pipeline_mode<synchronous>, transform_indices = @transform_6, window_bounds = array<i64: 128, 128>}, {transform_indices = @transform_7, window_bounds = array<i64: 8, 128>}]} {
    %c0 = arith.constant 0 : index
    %c0_0 = arith.constant 0 : index
    %0 = vector.load %arg1[%c0, %c0_0] : memref<8x128xf32, #tpu.memory_space<vmem>>, vector<8x128xf32>
    %c0_1 = arith.constant 0 : index
    %c0_2 = arith.constant 0 : index
    %1 = vector.load %arg2[%c0_1, %c0_2] : memref<8x128xf32, #tpu.memory_space<vmem>>, vector<8x128xf32>
    %c0_3 = arith.constant 0 : index
    %c0_4 = arith.constant 0 : index
    %2 = vector.load %arg3[%c0_3, %c0_4] : memref<8x128xf32, #tpu.memory_space<vmem>>, vector<8x128xf32>
    %3 = vector.extract_strided_slice %2 {offsets = [0, 0], sizes = [1, 128], strides = [1, 1]} : vector<8x128xf32> to vector<1x128xf32>
    %4 = vector.extract_strided_slice %2 {offsets = [1, 0], sizes = [1, 128], strides = [1, 1]} : vector<8x128xf32> to vector<1x128xf32>
    %5 = vector.extract_strided_slice %2 {offsets = [2, 0], sizes = [1, 128], strides = [1, 1]} : vector<8x128xf32> to vector<1x128xf32>
    %6 = vector.extract_strided_slice %2 {offsets = [3, 0], sizes = [1, 128], strides = [1, 1]} : vector<8x128xf32> to vector<1x128xf32>
    %7 = vector.broadcast %3 : vector<1x128xf32> to vector<8x128xf32>
    %8 = arith.mulf %7, %0 : vector<8x128xf32>
    %9 = vector.broadcast %4 : vector<1x128xf32> to vector<8x128xf32>
    %10 = arith.addf %8, %9 : vector<8x128xf32>
    %11 = arith.addf %10, %1 : vector<8x128xf32>
    %c0_5 = arith.constant 0 : index
    %c0_6 = arith.constant 0 : index
    %12 = vector.load %arg4[%c0_5, %c0_6] : memref<128x128xf32, #tpu.memory_space<vmem>>, vector<128x128xf32>
    %cst = arith.constant dense<0.000000e+00> : vector<8x128xf32>
    %13 = tpu.matmul %11, %12, %cst {dimension_numbers = #tpu.dot_dimension_numbers<[1], [0], [0], [1], [0, 0, 1, 1], [], []>} : vector<8x128xf32>, vector<128x128xf32>, vector<8x128xf32> -> vector<8x128xf32>
    %14 = arith.mulf %13, %13 : vector<8x128xf32>
    %c0_7 = arith.constant 0 : index
    %c0_8 = arith.constant 0 : index
    %15 = vector.load %arg5[%c0_7, %c0_8] : memref<128x128xf32, #tpu.memory_space<vmem>>, vector<128x128xf32>
    %cst_9 = arith.constant dense<0.000000e+00> : vector<8x128xf32>
    %16 = tpu.matmul %13, %15, %cst_9 {dimension_numbers = #tpu.dot_dimension_numbers<[1], [0], [0], [1], [0, 0, 1, 1], [], []>} : vector<8x128xf32>, vector<128x128xf32>, vector<8x128xf32> -> vector<8x128xf32>
    %c0_10 = arith.constant 0 : index
    %c0_11 = arith.constant 0 : index
    %17 = vector.load %arg5[%c0_10, %c0_11] : memref<128x128xf32, #tpu.memory_space<vmem>>, vector<128x128xf32>
    %cst_12 = arith.constant dense<0.000000e+00> : vector<8x128xf32>
    %18 = tpu.matmul %14, %17, %cst_12 {dimension_numbers = #tpu.dot_dimension_numbers<[1], [0], [0], [1], [0, 0, 1, 1], [], []>} : vector<8x128xf32>, vector<128x128xf32>, vector<8x128xf32> -> vector<8x128xf32>
    %19 = arith.mulf %16, %16 : vector<8x128xf32>
    %20 = arith.subf %18, %19 : vector<8x128xf32>
    %cst_13 = arith.constant 0.000000e+00 : f32
    %21 = vector.broadcast %cst_13 : f32 to vector<8x128xf32>
    %22 = arith.maximumf %20, %21 : vector<8x128xf32>
    %23 = arith.subf %13, %16 : vector<8x128xf32>
    %cst_14 = arith.constant 9.99999974E-6 : f32
    %24 = vector.broadcast %cst_14 : f32 to vector<8x128xf32>
    %25 = arith.addf %22, %24 : vector<8x128xf32>
    %26 = math.rsqrt %25 : vector<8x128xf32>
    %27 = arith.mulf %23, %26 : vector<8x128xf32>
    %c0_15 = arith.constant 0 : index
    %c0_16 = arith.constant 0 : index
    %28 = vector.load %arg6[%c0_15, %c0_16] : memref<128x256xf32, #tpu.memory_space<vmem>>, vector<128x256xf32>
    %cst_17 = arith.constant dense<0.000000e+00> : vector<8x256xf32>
    %29 = tpu.matmul %27, %28, %cst_17 {dimension_numbers = #tpu.dot_dimension_numbers<[1], [0], [0], [1], [0, 0, 1, 1], [], []>} : vector<8x128xf32>, vector<128x256xf32>, vector<8x256xf32> -> vector<8x256xf32>
    %30 = vector.extract_strided_slice %29 {offsets = [0, 0], sizes = [8, 128], strides = [1, 1]} : vector<8x256xf32> to vector<8x128xf32>
    %cst_18 = arith.constant 0.000000e+00 : f32
    %31 = vector.broadcast %cst_18 : f32 to vector<8x128xf32>
    %32 = arith.maximumf %30, %31 : vector<8x128xf32>
    %33 = vector.extract_strided_slice %29 {offsets = [0, 128], sizes = [8, 128], strides = [1, 1]} : vector<8x256xf32> to vector<8x128xf32>
    %34 = arith.mulf %32, %33 : vector<8x128xf32>
    %c0_19 = arith.constant 0 : index
    %c0_20 = arith.constant 0 : index
    %35 = vector.load %arg7[%c0_19, %c0_20] : memref<128x128xf32, #tpu.memory_space<vmem>>, vector<128x128xf32>
    %cst_21 = arith.constant dense<0.000000e+00> : vector<8x128xf32>
    %36 = tpu.matmul %34, %35, %cst_21 {dimension_numbers = #tpu.dot_dimension_numbers<[1], [0], [0], [1], [0, 0, 1, 1], [], []>} : vector<8x128xf32>, vector<128x128xf32>, vector<8x128xf32> -> vector<8x128xf32>
    %37 = vector.broadcast %5 : vector<1x128xf32> to vector<8x128xf32>
    %38 = arith.mulf %37, %11 : vector<8x128xf32>
    %39 = vector.broadcast %6 : vector<1x128xf32> to vector<8x128xf32>
    %40 = arith.addf %38, %39 : vector<8x128xf32>
    %41 = arith.addf %40, %36 : vector<8x128xf32>
    %c0_22 = arith.constant 0 : index
    %c0_23 = arith.constant 0 : index
    %42 = vector.load %arg8[%c0_22, %c0_23] : memref<8x128xf32, #tpu.memory_space<vmem>>, vector<8x128xf32>
    tpu.vector_store %arg8[%c0_22, %c0_23], %41 {strides = array<i32>} : memref<8x128xf32, #tpu.memory_space<vmem>>, vector<8x128xf32>,
    return
  }
  func.func @transform_0(%arg0: i32) -> (i32, i32) {
    %c0_i32 = arith.constant 0 : i32
    %c0_i32_0 = arith.constant 0 : i32
    return %arg0, %c0_i32 : i32, i32
  }
  func.func @transform_1(%arg0: i32) -> (i32, i32) {
    %c0_i32 = arith.constant 0 : i32
    %c0_i32_0 = arith.constant 0 : i32
    return %arg0, %c0_i32 : i32, i32
  }
  func.func @transform_2(%arg0: i32) -> (i32, i32) {
    %c0_i32 = arith.constant 0 : i32
    %c0_i32_0 = arith.constant 0 : i32
    %c0_i32_1 = arith.constant 0 : i32
    return %c0_i32, %c0_i32_0 : i32, i32
  }
  func.func @transform_3(%arg0: i32) -> (i32, i32) {
    %c0_i32 = arith.constant 0 : i32
    %c0_i32_0 = arith.constant 0 : i32
    %c0_i32_1 = arith.constant 0 : i32
    return %c0_i32, %c0_i32_0 : i32, i32
  }
  func.func @transform_4(%arg0: i32) -> (i32, i32) {
    %c0_i32 = arith.constant 0 : i32
    %c0_i32_0 = arith.constant 0 : i32
    %c0_i32_1 = arith.constant 0 : i32
    return %c0_i32, %c0_i32_0 : i32, i32
  }
  func.func @transform_5(%arg0: i32) -> (i32, i32) {
    %c0_i32 = arith.constant 0 : i32
    %c0_i32_0 = arith.constant 0 : i32
    %c0_i32_1 = arith.constant 0 : i32
    return %c0_i32, %c0_i32_0 : i32, i32
  }
  func.func @transform_6(%arg0: i32) -> (i32, i32) {
    %c0_i32 = arith.constant 0 : i32
    %c0_i32_0 = arith.constant 0 : i32
    %c0_i32_1 = arith.constant 0 : i32
    return %c0_i32, %c0_i32_0 : i32, i32
  }
  func.func @transform_7(%arg0: i32) -> (i32, i32) {
    %c0_i32 = arith.constant 0 : i32
    %c0_i32_0 = arith.constant 0 : i32
    return %arg0, %c0_i32 : i32, i32
  }
}

</mosaic_0001>

<bundles_post_ra>
// kernel: tpu_custom_call.1
= control target key start
LH: loop header
LB: loop body
LE: loop exit
PB: predicated region body
PF: predicated region fallthrough
CT: control target
= control target key end

     0   :  { %12 = vsyncpa [#allocation3], 0  ;;  %s700_s0 = inlined_call_operand.hbm [shape: f32[8,128], index: 0, kind: input, shape index: {}]   ;;  %s701_s1 = inlined_call_operand.hbm [shape: f32[8,128], index: 1, kind: input, shape index: {}]   ;;  %s702_s2 = inlined_call_operand.hbm [shape: f32[8,128], index: 2, kind: input, shape index: {}]   ;;  %s703_s3 = inlined_call_operand.hbm [shape: f32[128,128], index: 3, kind: input, shape index: {}]   ;;  %s704_s4 = inlined_call_operand.hbm [shape: f32[128,128], index: 4, kind: input, shape index: {}]   ;;  %s705_s5 = inlined_call_operand.hbm [shape: f32[128,256], index: 5, kind: input, shape index: {}]   ;;  %s706_s6 = inlined_call_operand.hbm [shape: f32[128,128], index: 6, kind: input, shape index: {}]   ;;  %s707_s7 = inlined_call_operand.hbm [shape: f32[8,128], index: 7, kind: output, shape index: {}]  }
   0x1   :  { %13 = vsyncpa [#allocation6], 0 }
   0x2   :  { %14 = vsyncpa [#allocation9], 0 }
   0x3   :  { %15 = vsyncpa [#allocation12], 0  ;;  %s33_s26 = sshll.u32 %s701_s1, 4  ;;  %s34_s26 = int_to_ptr.hbm [resolvable:$true] %s33_s26 }
   0x4   :  { %16 = vsyncpa [#allocation4], 0  ;;  %s599_s27 = smov [#allocation5]   ;;  %s54_s8 = sshll.u32 %s703_s3, 4  ;;  %s55_s8 = int_to_ptr.hbm [resolvable:$true] %s54_s8 }
   0x5   :  { %s35_s28 = sshll.u32 %s599_s27, 4  ;;  %s600_s9 = smov [#allocation8]   ;;  %s36_s28 = int_to_ptr.vmem [resolvable:$true] %s35_s28 }
   0x6   :  { %38 = dma.hbm_to_vmem [thread:$0]  %s34_s26, 128, %s36_s28, [#allocation6]  }
   0x7   :  { %s56_s10 = sshll.u32 %s600_s9, 4  ;;  %s601_s11 = smov 128   ;;  %s57_s10 = int_to_ptr.vmem [resolvable:$true] %s56_s10 }
   0x8   :  { %s602_s12 = smov 8   ;;  %s80_s14 = sshll.u32 %s705_s5, 4  ;;  %s81_s14 = int_to_ptr.hbm [resolvable:$true] %s80_s14 }
   0x9   :  { %62 = dma.hbm_to_vmem [thread:$0]  %s55_s8, 2048, %s57_s10, [#allocation9], %s601_s11, %s601_s11, %s602_s12  }
   0xa   :  { %s603_s15 = smov [#allocation11]   ;;  %s22_s18 = sshll.u32 %s700_s0, 4  ;;  %s23_s18 = int_to_ptr.hbm [resolvable:$true] %s22_s18 }
   0xb   :  { %s82_s16 = sshll.u32 %s603_s15, 4  ;;  %s604_s19 = smov 256   ;;  %s83_s16 = int_to_ptr.vmem [resolvable:$true] %s82_s16 }
   0xc   :  { %s605_s20 = smov 16   ;;  %s606_s21 = smov [#allocation2]  }
   0xd   :  { %88 = dma.hbm_to_vmem [thread:$0]  %s81_s14, 4096, %s83_s16, [#allocation12], %s604_s19, %s604_s19, %s605_s20  }
   0xe   :  { %s24_s22 = sshll.u32 %s606_s21, 4  ;;  %s44_s25 = sshll.u32 %s702_s2, 4  ;;  %s25_s22 = int_to_ptr.vmem [resolvable:$true] %s24_s22  ;;  %s45_s25 = int_to_ptr.hbm [resolvable:$true] %s44_s25 }
   0xf   :  { %27 = dma.hbm_to_vmem [thread:$0]  %s23_s18, 128, %s25_s22, [#allocation3]  }
  0x10   :  { %s67_s27 = sshll.u32 %s704_s4, 4  ;;  %s607_s28 = smov [#allocation7]   ;;  %s68_s27 = int_to_ptr.hbm [resolvable:$true] %s67_s27 }
  0x11   :  { %s46_s29 = sshll.u32 %s607_s28, 4  ;;  %s608_s0 = smov [#allocation10]   ;;  %s47_s29 = int_to_ptr.vmem [resolvable:$true] %s46_s29 }
  0x12   :  { %49 = dma.hbm_to_vmem [thread:$0]  %s45_s25, 128, %s47_s29, [#allocation6]  }
  0x13   :  { %s69_s30 = sshll.u32 %s608_s0, 4  ;;  %s93_s10 = sshll.u32 %s706_s6, 4  ;;  %s70_s30 = int_to_ptr.vmem [resolvable:$true] %s69_s30  ;;  %s94_s10 = int_to_ptr.hbm [resolvable:$true] %s93_s10 }
  0x14   :  { %75 = dma.hbm_to_vmem [thread:$0]  %s68_s27, 2048, %s70_s30, [#allocation9], %s601_s11, %s601_s11, %s602_s12  }
  0x15   :  { %s609_s2 = smov [#allocation13]  }
  0x16   :  { %s95_s1 = sshll.u32 %s609_s2, 4  ;;  %s96_s1 = int_to_ptr.vmem [resolvable:$true] %s95_s1 }
  0x17   :  { %101 = dma.hbm_to_vmem [thread:$0]  %s94_s10, 2048, %s96_s1, [#allocation12], %s601_s11, %s601_s11, %s602_s12  }
  0x18   :  { %589 = dma.done.wait [#allocation3], 128  }
  0x19   :  { %590 = vsyncadd [#allocation3], 4294967168 }
  0x1a   :  { %591 = dma.done.wait [#allocation6], 256  }
  0x1b   :  { %592 = vsyncadd [#allocation6], 4294967040 }
  0x1c   :  { %593 = dma.done.wait [#allocation9], 4096  }
  0x1d   :  { %594 = vsyncadd [#allocation9], 4294963200 }
  0x1e   :  { %595 = dma.done.wait [#allocation12], 6144  }
  0x1f   :  { %596 = vsyncadd [#allocation12], 4294961152  ;;  %v153_v0 = vld [vmem:[#allocation8 + $0x78] sm:$0xff]  ;;  %v152_v1 = vld [vmem:[#allocation8 + $0x70] sm:$0xff]  ;;  %s610_s4 = smov [#allocation14]   ;;  %s370_s13 = sshll.u32 %s707_s7, 4  ;;  %s371_s13 = int_to_ptr.hbm [resolvable:$true] %s370_s13 }
  0x20   :  { %154 = vmatpush.msra.mxu0 %v153_v0  ;;  %v151_v2 = vld [vmem:[#allocation8 + $0x68] sm:$0xff]  ;;  %v150_v3 = vld [vmem:[#allocation8 + $0x60] sm:$0xff]  ;;  %v149_v4 = vld [vmem:[#allocation8 + $0x58] sm:$0xff]  ;;  %s368_s6 = sshll.u32 %s610_s4, 4  ;;  %s369_s6 = int_to_ptr.vmem [resolvable:$true] %s368_s6 }
  0x21   :  { %v190_v5 = vld [vmem:[#allocation10 + $0x78] sm:$0xff]  ;;  %v189_v6 = vld [vmem:[#allocation10 + $0x70] sm:$0xff]  ;;  %v188_v8 = vld [vmem:[#allocation10 + $0x68] sm:$0xff] }
  0x22   :  { %155 = vmatpush.msra.mxu0 %v152_v1  ;;  %191 = vmatpush.msra.mxu1 %v190_v5  ;;  %v148_v7 = vld [vmem:[#allocation8 + $0x50] sm:$0xff]  ;;  %v147_v9 = vld [vmem:[#allocation8 + $0x48] sm:$0xff]  ;;  %v187_v10 = vld [vmem:[#allocation10 + $0x60] sm:$0xff] }
  0x23   :  { %211 = vmatpush.msra.mxu2 %v190_v5  ;;  %v146_v11 = vld [vmem:[#allocation8 + $0x40] sm:$0xff]  ;;  %v186_v12 = vld [vmem:[#allocation10 + $0x58] sm:$0xff]  ;;  %v185_v15 = vld [vmem:[#allocation10 + $0x50] sm:$0xff] }
  0x24   :  { %156 = vmatpush.msra.mxu0 %v151_v2  ;;  %192 = vmatpush.msra.mxu1 %v189_v6  ;;  %v681_v13 = vld [vmem:[#allocation7] sm:$0xff]  ;;  %v144_v16 = vld [vmem:[#allocation8 + $0x30] sm:$0xff]  ;;  %v184_v18 = vld [vmem:[#allocation10 + $0x48] sm:$0xff] }
  0x25   :  { %212 = vmatpush.msra.mxu2 %v189_v6  ;;  %v145_v14 = vld [vmem:[#allocation8 + $0x38] sm:$0xff]  ;;  %v133_v17 = vperm.slane %v681_v13, 0  ;;  %v130_v19 = vld [vmem:[#allocation2] sm:$0xff]  ;;  %v183_v21 = vld [vmem:[#allocation10 + $0x40] sm:$0xff]  ;;  %v135_v24 = vperm.slane %v681_v13, 1 }
  0x26   :  { %157 = vmatpush.msra.mxu0 %v150_v3  ;;  %193 = vmatpush.msra.mxu1 %v188_v8  ;;  %v143_v20 = vld [vmem:[#allocation8 + $0x28] sm:$0xff]  ;;  %v142_v22 = vld [vmem:[#allocation8 + $0x20] sm:$0xff]  ;;  %v182_v25 = vld [vmem:[#allocation10 + $0x38] sm:$0xff] }
  0x27   :  { %213 = vmatpush.msra.mxu2 %v188_v8  ;;  %v134_v23 = vmul.f32 %v133_v17, %v130_v19  ;;  %v141_v26 = vld [vmem:[#allocation8 + $0x18] sm:$0xff]  ;;  %v181_v27 = vld [vmem:[#allocation10 + $0x30] sm:$0xff]  ;;  %v180_v30 = vld [vmem:[#allocation10 + $0x28] sm:$0xff] }
  0x28   :  { %158 = vmatpush.msra.mxu0 %v149_v4  ;;  %194 = vmatpush.msra.mxu1 %v187_v10  ;;  %v140_v28 = vld [vmem:[#allocation8 + $0x10] sm:$0xff]  ;;  %v139_v32 = vld [vmem:[#allocation8 + $0x8] sm:$0xff]  ;;  %v179_v33 = vld [vmem:[#allocation10 + $0x20] sm:$0xff] }
  0x29   :  { %214 = vmatpush.msra.mxu2 %v187_v10  ;;  %v136_v29 = vadd.f32 %v135_v24, %v134_v23  ;;  %v131_v31 = vld [vmem:[#allocation5] sm:$0xff]  ;;  %v138_v34 = vld [vmem:[#allocation8] sm:$0xff]  ;;  %v178_v36 = vld [vmem:[#allocation10 + $0x18] sm:$0xff] }
  0x2a   :  { %159 = vmatpush.msra.mxu0 %v148_v7  ;;  %195 = vmatpush.msra.mxu1 %v186_v12  ;;  %v177_v37 = vld [vmem:[#allocation10 + $0x10] sm:$0xff]  ;;  %v176_v38 = vld [vmem:[#allocation10 + $0x8] sm:$0xff]  ;;  %v175_v39 = vld [vmem:[#allocation10] sm:$0xff] }
  0x2b   :  { %215 = vmatpush.msra.mxu2 %v186_v12  ;;  %v685_v35 = vadd.f32 %v136_v29, %v131_v31  ;;  %v277_v42 = vld [vmem:[#allocation11 + $0xf0] sm:$0xff]  ;;  %v278_v43 = vld [vmem:[#allocation11 + $0xf8] sm:$0xff]  ;;  %v275_v44 = vld [vmem:[#allocation11 + $0xe0] sm:$0xff] }
  0x2c   :  { %160 = vmatpush.msra.mxu0 %v147_v9  ;;  %196 = vmatpush.msra.mxu1 %v185_v15  ;;  %v276_v45 = vld [vmem:[#allocation11 + $0xe8] sm:$0xff]  ;;  %v273_v46 = vld [vmem:[#allocation11 + $0xd0] sm:$0xff]  ;;  %v274_v47 = vld [vmem:[#allocation11 + $0xd8] sm:$0xff] }
  0x2d   :  { %216 = vmatpush.msra.mxu2 %v185_v15  ;;  %279 = vmatpush.msra.mxu3 %v277_v42  ;;  %v271_v48 = vld [vmem:[#allocation11 + $0xc0] sm:$0xff]  ;;  %v272_v49 = vld [vmem:[#allocation11 + $0xc8] sm:$0xff]  ;;  %v269_v50 = vld [vmem:[#allocation11 + $0xb0] sm:$0xff] }
  0x2e   :  { %161 = vmatpush.msra.mxu0 %v146_v11  ;;  %197 = vmatpush.msra.mxu1 %v184_v18  ;;  %v270_v51 = vld [vmem:[#allocation11 + $0xb8] sm:$0xff]  ;;  %v267_v52 = vld [vmem:[#allocation11 + $0xa0] sm:$0xff]  ;;  %v268_v53 = vld [vmem:[#allocation11 + $0xa8] sm:$0xff] }
  0x2f   :  { %217 = vmatpush.msra.mxu2 %v184_v18  ;;  %280 = vmatpush.msra.mxu3 %v275_v44  ;;  %v265_v54 = vld [vmem:[#allocation11 + $0x90] sm:$0xff]  ;;  %v266_v55 = vld [vmem:[#allocation11 + $0x98] sm:$0xff]  ;;  %v263_v56 = vld [vmem:[#allocation11 + $0x80] sm:$0xff] }
  0x30   :  { %162 = vmatpush.msra.mxu0 %v145_v14  ;;  %198 = vmatpush.msra.mxu1 %v183_v21  ;;  %v264_v57 = vld [vmem:[#allocation11 + $0x88] sm:$0xff]  ;;  %v261_v58 = vld [vmem:[#allocation11 + $0x70] sm:$0xff]  ;;  %v262_v59 = vld [vmem:[#allocation11 + $0x78] sm:$0xff] }
  0x31   :  { %218 = vmatpush.msra.mxu2 %v183_v21  ;;  %281 = vmatpush.msra.mxu3 %v273_v46  ;;  %v259_v60 = vld [vmem:[#allocation11 + $0x60] sm:$0xff]  ;;  %v260_v61 = vld [vmem:[#allocation11 + $0x68] sm:$0xff]  ;;  %v257_v62 = vld [vmem:[#allocation11 + $0x50] sm:$0xff] }
  0x32   :  { %163 = vmatpush.msra.mxu0 %v144_v16  ;;  %199 = vmatpush.msra.mxu1 %v182_v25  ;;  %v258_v63 = vld [vmem:[#allocation11 + $0x58] sm:$0xff]  ;;  %v255_v0 = vld [vmem:[#allocation11 + $0x40] sm:$0xff]  ;;  %v256_v1 = vld [vmem:[#allocation11 + $0x48] sm:$0xff] }
  0x33   :  { %219 = vmatpush.msra.mxu2 %v182_v25  ;;  %282 = vmatpush.msra.mxu3 %v271_v48  ;;  %v253_v2 = vld [vmem:[#allocation11 + $0x30] sm:$0xff]  ;;  %v254_v3 = vld [vmem:[#allocation11 + $0x38] sm:$0xff]  ;;  %v251_v4 = vld [vmem:[#allocation11 + $0x20] sm:$0xff] }
  0x34   :  { %164 = vmatpush.msra.mxu0 %v143_v20  ;;  %200 = vmatpush.msra.mxu1 %v181_v27  ;;  %v252_v5 = vld [vmem:[#allocation11 + $0x28] sm:$0xff]  ;;  %v249_v6 = vld [vmem:[#allocation11 + $0x10] sm:$0xff]  ;;  %v250_v7 = vld [vmem:[#allocation11 + $0x18] sm:$0xff] }
  0x35   :  { %220 = vmatpush.msra.mxu2 %v181_v27  ;;  %283 = vmatpush.msra.mxu3 %v269_v50  ;;  %v247_v8 = vld [vmem:[#allocation11] sm:$0xff]  ;;  %v248_v9 = vld [vmem:[#allocation11 + $0x8] sm:$0xff]  ;;  %v336_v10 = vld [vmem:[#allocation13 + $0x78] sm:$0xff] }
  0x36   :  { %165 = vmatpush.msra.mxu0 %v142_v22  ;;  %201 = vmatpush.msra.mxu1 %v180_v30  ;;  %v335_v11 = vld [vmem:[#allocation13 + $0x70] sm:$0xff]  ;;  %v334_v14 = vld [vmem:[#allocation13 + $0x68] sm:$0xff]  ;;  %v333_v16 = vld [vmem:[#allocation13 + $0x60] sm:$0xff] }
  0x37   :  { %221 = vmatpush.msra.mxu2 %v180_v30  ;;  %284 = vmatpush.msra.mxu3 %v267_v52  ;;  %v332_v19 = vld [vmem:[#allocation13 + $0x58] sm:$0xff]  ;;  %v331_v21 = vld [vmem:[#allocation13 + $0x50] sm:$0xff]  ;;  %v330_v23 = vld [vmem:[#allocation13 + $0x48] sm:$0xff] }
  0x38   :  { %166 = vmatpush.msra.mxu0 %v141_v26  ;;  %202 = vmatpush.msra.mxu1 %v179_v33  ;;  %v329_v24 = vld [vmem:[#allocation13 + $0x40] sm:$0xff]  ;;  %v328_v25 = vld [vmem:[#allocation13 + $0x38] sm:$0xff]  ;;  %v327_v26 = vld [vmem:[#allocation13 + $0x30] sm:$0xff] }
  0x39   :  { %222 = vmatpush.msra.mxu2 %v179_v33  ;;  %285 = vmatpush.msra.mxu3 %v265_v54  ;;  %v322_v42 = vld [vmem:[#allocation13 + $0x8] sm:$0xff] }
  0x3a   :  { %167 = vmatpush.msra.mxu0 %v140_v28  ;;  %203 = vmatpush.msra.mxu1 %v178_v36 }
  0x3b   :  { %223 = vmatpush.msra.mxu2 %v178_v36  ;;  %286 = vmatpush.msra.mxu3 %v263_v56 }
  0x3c   :  { %168 = vmatpush.msra.mxu0 %v139_v32  ;;  %204 = vmatpush.msra.mxu1 %v177_v37 }
  0x3d   :  { %224 = vmatpush.msra.mxu2 %v177_v37  ;;  %287 = vmatpush.msra.mxu3 %v261_v58  ;;  %v326_v37 = vld [vmem:[#allocation13 + $0x28] sm:$0xff] }
  0x3e   :  { %169 = vmatpush.msra.mxu0 %v138_v34  ;;  %205 = vmatpush.msra.mxu1 %v176_v38 }
  0x3f   :  { %170 = vmatmul.f32.vlgmr.msra.gmra.mxu0 %v685_v35  ;;  %225 = vmatpush.msra.mxu2 %v176_v38  ;;  %v325_v38 = vld [vmem:[#allocation13 + $0x20] sm:$0xff] }
  0x40   :  { %206 = vmatpush.msra.mxu1 %v175_v39  ;;  %299 = vmatpush.msrb.mxu0 %v278_v43  ;;  %v321_v43 = vld [vmem:[#allocation13] sm:$0xff] }
  0x41   :  { %226 = vmatpush.msra.mxu2 %v175_v39  ;;  %288 = vmatpush.msra.mxu3 %v259_v60  ;;  %v324_v39 = vld [vmem:[#allocation13 + $0x18] sm:$0xff] }
  0x42   :  { %300 = vmatpush.msrb.mxu0 %v276_v45  ;;  %337 = vmatpush.msrb.mxu1 %v336_v10 }
  0x43   :  { %289 = vmatpush.msra.mxu3 %v257_v62 }
  0x44   :  { %301 = vmatpush.msrb.mxu0 %v274_v47  ;;  %338 = vmatpush.msrb.mxu1 %v335_v11  ;;  %v357_v47 = vperm.slane %v681_v13, 2 }
  0x45   :  { %290 = vmatpush.msra.mxu3 %v255_v0 }
  0x46   :  { %302 = vmatpush.msrb.mxu0 %v272_v49  ;;  %339 = vmatpush.msrb.mxu1 %v334_v14  ;;  %v358_v48 = vmul.f32 %v357_v47, %v685_v35  ;;  %v359_v49 = vperm.slane %v681_v13, 3 }
  0x47   :  { %291 = vmatpush.msra.mxu3 %v253_v2 }
  0x48   :  { %303 = vmatpush.msrb.mxu0 %v270_v51  ;;  %340 = vmatpush.msrb.mxu1 %v333_v16  ;;  %v360_v50 = vadd.f32 %v359_v49, %v358_v48 }
  0x49   :  { %292 = vmatpush.msra.mxu3 %v251_v4 }
  0x4a   :  { %304 = vmatpush.msrb.mxu0 %v268_v53  ;;  %341 = vmatpush.msrb.mxu1 %v332_v19 }
  0x4b   :  { %293 = vmatpush.msra.mxu3 %v249_v6 }
  0x4c   :  { %305 = vmatpush.msrb.mxu0 %v266_v55  ;;  %342 = vmatpush.msrb.mxu1 %v331_v21 }
  0x4d   :  { %294 = vmatpush.msra.mxu3 %v247_v8 }
  0x4e   :  { %306 = vmatpush.msrb.mxu0 %v264_v57  ;;  %343 = vmatpush.msrb.mxu1 %v330_v23 }
  0x50   :  { %307 = vmatpush.msrb.mxu0 %v262_v59  ;;  %344 = vmatpush.msrb.mxu1 %v329_v24 }
  0x52   :  { %308 = vmatpush.msrb.mxu0 %v260_v61  ;;  %345 = vmatpush.msrb.mxu1 %v328_v25 }
  0x54   :  { %309 = vmatpush.msrb.mxu0 %v258_v63  ;;  %346 = vmatpush.msrb.mxu1 %v327_v26 }
  0x56   :  { %310 = vmatpush.msrb.mxu0 %v256_v1  ;;  %347 = vmatpush.msrb.mxu1 %v326_v37 }
  0x58   :  { %311 = vmatpush.msrb.mxu0 %v254_v3  ;;  %348 = vmatpush.msrb.mxu1 %v325_v38 }
  0x5a   :  { %312 = vmatpush.msrb.mxu0 %v252_v5  ;;  %349 = vmatpush.msrb.mxu1 %v324_v39 }
  0x5c   :  { %313 = vmatpush.msrb.mxu0 %v250_v7 }
  0x5e   :  { %314 = vmatpush.msrb.mxu0 %v248_v9 }
  0xbc   :  { %v688_v40 = vpop.f32.mrf.mxu0 }
  0xbd   :  { %207 = vmatmul.f32.vlgmr.msra.gmra.mxu1 %v688_v40  ;;  %v174_v41 = vmul.f32 %v688_v40, %v688_v40 }
  0xbf   :  { %227 = vmatmul.f32.vlgmr.msra.gmra.mxu2 %v174_v41  ;;  %v323_v41 = vld [vmem:[#allocation13 + $0x10] sm:$0xff] }
  0xc0   :  { %350 = vmatpush.msrb.mxu1 %v323_v41 }
  0xc2   :  { %351 = vmatpush.msrb.mxu1 %v322_v42 }
  0xc4   :  { %352 = vmatpush.msrb.mxu1 %v321_v43 }
 0x13a   :  { %v208_v12 = vpop.f32.mrf.mxu1 }
 0x13b   :  { %v231_v15 = vmul.f32 %v208_v12, %v208_v12  ;;  %v234_v33 = vsub.f32 %v688_v40, %v208_v12 }
 0x142   :  { %v228_v17 = vpop.f32.mrf.mxu2 }
 0x143   :  { %v232_v18 = vsub.f32 %v228_v17, %v231_v15 }
 0x145   :  { %v233_v20 = vmax.f32 %v232_v18, 0.0 }
 0x147   :  { %v235_v22 = vadd.f32 1e-05, %v233_v20 }
 0x149   :  { %395 = vrsqrt.f32 %v235_v22  ;;  %vm242_vm1 = vweird.f32 %v235_v22 }
 0x14f   :  { %v396_v27 = vpop.eup %395 }
 0x150   :  { %v237_v28 = vmul.f32 %v396_v27, %v235_v22  ;;  %vm243_vm0 = vweird.f32 %v396_v27 }
 0x151   :  { %vm244_vm2 = vmor %vm242_vm1, %vm243_vm0 }
 0x152   :  { %v238_v29 = vmul.f32 %v396_v27, %v237_v28 }
 0x154   :  { %v239_v30 = vmul.f32 0.5, %v238_v29 }
 0x156   :  { %v240_v31 = vsub.f32 1.5, %v239_v30 }
 0x158   :  { %v241_v32 = vmul.f32 %v396_v27, %v240_v31 }
 0x15a   :  { %v245_v34 = vsel %vm244_vm2, %v396_v27, %v241_v32 }
 0x15b   :  { %v246_v36 = vmul.f32 %v245_v34, %v234_v33 }
 0x15d   :  { %295 = vmatmul.f32.vlgmr.msra.gmra.mxu3 %v246_v36  ;;  %315 = vmatmul.f32.vlgmr.msrb.gmra.mxu0 %v246_v36 }
 0x1da   :  { %v316_v40 = vpop.f32.mrf.mxu0 }
 0x1e0   :  { %v296_v44 = vpop.f32.mrf.mxu3 }
 0x1e1   :  { %v319_v45 = vmax.f32 %v296_v44, 0.0 }
 0x1e3   :  { %v320_v46 = vmul.f32 %v319_v45, %v316_v40 }
 0x1e5   :  { %353 = vmatmul.f32.vlgmr.msrb.gmra.mxu1 %v320_v46 }
 0x262   :  { %v354_v51 = vpop.f32.mrf.mxu1 }
 0x263   :  { %v361_v52 = vadd.f32 %v360_v50, %v354_v51 }
 0x265   :  { %362 = vst [vmem:[#allocation14] sm:$0xff] %v361_v52 }
 0x266   :  { %373 = dma.vmem_to_hbm [thread:$0]  %s369_s6, 128, %s371_s13, [#allocation4]  }
 0x267   :  { %597 = dma.done.wait [#allocation4], 128  }
 0x268   :  { %598 = vsyncadd [#allocation4], 4294967168 }
 0x269   :  { %378 = vsyncpa [#allocation3], 1 }
 0x26a   :  { %379 = vsyncpa [#allocation6], 1 }
 0x26b   :  { %380 = vsyncpa [#allocation9], 1 }
 0x26c   :  { %381 = vsyncpa [#allocation12], 1 }
 0x26d   :  { %382 = vsyncpa [#allocation4], 1 }

// kernel: tpu_custom_call.1
= control target key start
LH: loop header
LB: loop body
LE: loop exit
PB: predicated region body
PF: predicated region fallthrough
CT: control target
= control target key end

     0   :  { %12 = vsyncpa [#allocation3], 0  ;;  %s700_s0 = inlined_call_operand.hbm [shape: f32[8,128], index: 0, kind: input, shape index: {}]   ;;  %s701_s1 = inlined_call_operand.hbm [shape: f32[8,128], index: 1, kind: input, shape index: {}]   ;;  %s702_s2 = inlined_call_operand.hbm [shape: f32[8,128], index: 2, kind: input, shape index: {}]   ;;  %s703_s3 = inlined_call_operand.hbm [shape: f32[128,128], index: 3, kind: input, shape index: {}]   ;;  %s704_s4 = inlined_call_operand.hbm [shape: f32[128,128], index: 4, kind: input, shape index: {}]   ;;  %s705_s5 = inlined_call_operand.hbm [shape: f32[128,256], index: 5, kind: input, shape index: {}]   ;;  %s706_s6 = inlined_call_operand.hbm [shape: f32[128,128], index: 6, kind: input, shape index: {}]   ;;  %s707_s7 = inlined_call_operand.hbm [shape: f32[8,128], index: 7, kind: output, shape index: {}]  }
   0x1   :  { %13 = vsyncpa [#allocation6], 0 }
   0x2   :  { %14 = vsyncpa [#allocation9], 0 }
   0x3   :  { %15 = vsyncpa [#allocation12], 0  ;;  %s33_s26 = sshll.u32 %s701_s1, 4  ;;  %s34_s26 = int_to_ptr.hbm [resolvable:$true] %s33_s26 }
   0x4   :  { %16 = vsyncpa [#allocation4], 0  ;;  %s599_s27 = smov [#allocation5]   ;;  %s54_s8 = sshll.u32 %s703_s3, 4  ;;  %s55_s8 = int_to_ptr.hbm [resolvable:$true] %s54_s8 }
   0x5   :  { %s35_s28 = sshll.u32 %s599_s27, 4  ;;  %s600_s9 = smov [#allocation8]   ;;  %s36_s28 = int_to_ptr.vmem [resolvable:$true] %s35_s28 }
   0x6   :  { %38 = dma.hbm_to_vmem [thread:$0]  %s34_s26, 128, %s36_s28, [#allocation6]  }
   0x7   :  { %s56_s10 = sshll.u32 %s600_s9, 4  ;;  %s601_s11 = smov 128   ;;  %s57_s10 = int_to_ptr.vmem [resolvable:$true] %s56_s10 }
   0x8   :  { %s602_s12 = smov 8   ;;  %s80_s14 = sshll.u32 %s705_s5, 4  ;;  %s81_s14 = int_to_ptr.hbm [resolvable:$true] %s80_s14 }
   0x9   :  { %62 = dma.hbm_to_vmem [thread:$0]  %s55_s8, 2048, %s57_s10, [#allocation9], %s601_s11, %s601_s11, %s602_s12  }
   0xa   :  { %s603_s15 = smov [#allocation11]   ;;  %s22_s18 = sshll.u32 %s700_s0, 4  ;;  %s23_s18 = int_to_ptr.hbm [resolvable:$true] %s22_s18 }
   0xb   :  { %s82_s16 = sshll.u32 %s603_s15, 4  ;;  %s604_s19 = smov 256   ;;  %s83_s16 = int_to_ptr.vmem [resolvable:$true] %s82_s16 }
   0xc   :  { %s605_s20 = smov 16   ;;  %s606_s21 = smov [#allocation2]  }
   0xd   :  { %88 = dma.hbm_to_vmem [thread:$0]  %s81_s14, 4096, %s83_s16, [#allocation12], %s604_s19, %s604_s19, %s605_s20  }
   0xe   :  { %s24_s22 = sshll.u32 %s606_s21, 4  ;;  %s44_s25 = sshll.u32 %s702_s2, 4  ;;  %s25_s22 = int_to_ptr.vmem [resolvable:$true] %s24_s22  ;;  %s45_s25 = int_to_ptr.hbm [resolvable:$true] %s44_s25 }
   0xf   :  { %27 = dma.hbm_to_vmem [thread:$0]  %s23_s18, 128, %s25_s22, [#allocation3]  }
  0x10   :  { %s67_s27 = sshll.u32 %s704_s4, 4  ;;  %s607_s28 = smov [#allocation7]   ;;  %s68_s27 = int_to_ptr.hbm [resolvable:$true] %s67_s27 }
  0x11   :  { %s46_s29 = sshll.u32 %s607_s28, 4  ;;  %s608_s0 = smov [#allocation10]   ;;  %s47_s29 = int_to_ptr.vmem [resolvable:$true] %s46_s29 }
  0x12   :  { %49 = dma.hbm_to_vmem [thread:$0]  %s45_s25, 128, %s47_s29, [#allocation6]  }
  0x13   :  { %s69_s30 = sshll.u32 %s608_s0, 4  ;;  %s93_s10 = sshll.u32 %s706_s6, 4  ;;  %s70_s30 = int_to_ptr.vmem [resolvable:$true] %s69_s30  ;;  %s94_s10 = int_to_ptr.hbm [resolvable:$true] %s93_s10 }
  0x14   :  { %75 = dma.hbm_to_vmem [thread:$0]  %s68_s27, 2048, %s70_s30, [#allocation9], %s601_s11, %s601_s11, %s602_s12  }
  0x15   :  { %s609_s2 = smov [#allocation13]  }
  0x16   :  { %s95_s1 = sshll.u32 %s609_s2, 4  ;;  %s96_s1 = int_to_ptr.vmem [resolvable:$true] %s95_s1 }
  0x17   :  { %101 = dma.hbm_to_vmem [thread:$0]  %s94_s10, 2048, %s96_s1, [#allocation12], %s601_s11, %s601_s11, %s602_s12  }
  0x18   :  { %589 = dma.done.wait [#allocation3], 128  }
  0x19   :  { %590 = vsyncadd [#allocation3], 4294967168 }
  0x1a   :  { %591 = dma.done.wait [#allocation6], 256  }
  0x1b   :  { %592 = vsyncadd [#allocation6], 4294967040 }
  0x1c   :  { %593 = dma.done.wait [#allocation9], 4096  }
  0x1d   :  { %594 = vsyncadd [#allocation9], 4294963200 }
  0x1e   :  { %595 = dma.done.wait [#allocation12], 6144  }
  0x1f   :  { %596 = vsyncadd [#allocation12], 4294961152  ;;  %v153_v0 = vld [vmem:[#allocation8 + $0x78] sm:$0xff]  ;;  %v152_v1 = vld [vmem:[#allocation8 + $0x70] sm:$0xff]  ;;  %s610_s4 = smov [#allocation14]   ;;  %s370_s13 = sshll.u32 %s707_s7, 4  ;;  %s371_s13 = int_to_ptr.hbm [resolvable:$true] %s370_s13 }
  0x20   :  { %154 = vmatpush.msra.mxu0 %v153_v0  ;;  %v151_v2 = vld [vmem:[#allocation8 + $0x68] sm:$0xff]  ;;  %v150_v3 = vld [vmem:[#allocation8 + $0x60] sm:$0xff]  ;;  %v149_v4 = vld [vmem:[#allocation8 + $0x58] sm:$0xff]  ;;  %s368_s6 = sshll.u32 %s610_s4, 4  ;;  %s369_s6 = int_to_ptr.vmem [resolvable:$true] %s368_s6 }
  0x21   :  { %v190_v5 = vld [vmem:[#allocation10 + $0x78] sm:$0xff]  ;;  %v189_v6 = vld [vmem:[#allocation10 + $0x70] sm:$0xff]  ;;  %v188_v8 = vld [vmem:[#allocation10 + $0x68] sm:$0xff] }
  0x22   :  { %155 = vmatpush.msra.mxu0 %v152_v1  ;;  %191 = vmatpush.msra.mxu1 %v190_v5  ;;  %v148_v7 = vld [vmem:[#allocation8 + $0x50] sm:$0xff]  ;;  %v147_v9 = vld [vmem:[#allocation8 + $0x48] sm:$0xff]  ;;  %v187_v10 = vld [vmem:[#allocation10 + $0x60] sm:$0xff] }
  0x23   :  { %211 = vmatpush.msra.mxu2 %v190_v5  ;;  %v146_v11 = vld [vmem:[#allocation8 + $0x40] sm:$0xff]  ;;  %v186_v12 = vld [vmem:[#allocation10 + $0x58] sm:$0xff]  ;;  %v185_v15 = vld [vmem:[#allocation10 + $0x50] sm:$0xff] }
  0x24   :  { %156 = vmatpush.msra.mxu0 %v151_v2  ;;  %192 = vmatpush.msra.mxu1 %v189_v6  ;;  %v681_v13 = vld [vmem:[#allocation7] sm:$0xff]  ;;  %v144_v16 = vld [vmem:[#allocation8 + $0x30] sm:$0xff]  ;;  %v184_v18 = vld [vmem:[#allocation10 + $0x48] sm:$0xff] }
  0x25   :  { %212 = vmatpush.msra.mxu2 %v189_v6  ;;  %v145_v14 = vld [vmem:[#allocation8 + $0x38] sm:$0xff]  ;;  %v133_v17 = vperm.slane %v681_v13, 0  ;;  %v130_v19 = vld [vmem:[#allocation2] sm:$0xff]  ;;  %v183_v21 = vld [vmem:[#allocation10 + $0x40] sm:$0xff]  ;;  %v135_v24 = vperm.slane %v681_v13, 1 }
  0x26   :  { %157 = vmatpush.msra.mxu0 %v150_v3  ;;  %193 = vmatpush.msra.mxu1 %v188_v8  ;;  %v143_v20 = vld [vmem:[#allocation8 + $0x28] sm:$0xff]  ;;  %v142_v22 = vld [vmem:[#allocation8 + $0x20] sm:$0xff]  ;;  %v182_v25 = vld [vmem:[#allocation10 + $0x38] sm:$0xff] }
  0x27   :  { %213 = vmatpush.msra.mxu2 %v188_v8  ;;  %v134_v23 = vmul.f32 %v133_v17, %v130_v19  ;;  %v141_v26 = vld [vmem:[#allocation8 + $0x18] sm:$0xff]  ;;  %v181_v27 = vld [vmem:[#allocation10 + $0x30] sm:$0xff]  ;;  %v180_v30 = vld [vmem:[#allocation10 + $0x28] sm:$0xff] }
  0x28   :  { %158 = vmatpush.msra.mxu0 %v149_v4  ;;  %194 = vmatpush.msra.mxu1 %v187_v10  ;;  %v140_v28 = vld [vmem:[#allocation8 + $0x10] sm:$0xff]  ;;  %v139_v32 = vld [vmem:[#allocation8 + $0x8] sm:$0xff]  ;;  %v179_v33 = vld [vmem:[#allocation10 + $0x20] sm:$0xff] }
  0x29   :  { %214 = vmatpush.msra.mxu2 %v187_v10  ;;  %v136_v29 = vadd.f32 %v135_v24, %v134_v23  ;;  %v131_v31 = vld [vmem:[#allocation5] sm:$0xff]  ;;  %v138_v34 = vld [vmem:[#allocation8] sm:$0xff]  ;;  %v178_v36 = vld [vmem:[#allocation10 + $0x18] sm:$0xff] }
  0x2a   :  { %159 = vmatpush.msra.mxu0 %v148_v7  ;;  %195 = vmatpush.msra.mxu1 %v186_v12  ;;  %v177_v37 = vld [vmem:[#allocation10 + $0x10] sm:$0xff]  ;;  %v176_v38 = vld [vmem:[#allocation10 + $0x8] sm:$0xff]  ;;  %v175_v39 = vld [vmem:[#allocation10] sm:$0xff] }
  0x2b   :  { %215 = vmatpush.msra.mxu2 %v186_v12  ;;  %v685_v35 = vadd.f32 %v136_v29, %v131_v31  ;;  %v277_v42 = vld [vmem:[#allocation11 + $0xf0] sm:$0xff]  ;;  %v278_v43 = vld [vmem:[#allocation11 + $0xf8] sm:$0xff]  ;;  %v275_v44 = vld [vmem:[#allocation11 + $0xe0] sm:$0xff] }
  0x2c   :  { %160 = vmatpush.msra.mxu0 %v147_v9  ;;  %196 = vmatpush.msra.mxu1 %v185_v15  ;;  %v276_v45 = vld [vmem:[#allocation11 + $0xe8] sm:$0xff]  ;;  %v273_v46 = vld [vmem:[#allocation11 + $0xd0] sm:$0xff]  ;;  %v274_v47 = vld [vmem:[#allocation11 + $0xd8] sm:$0xff] }
  0x2d   :  { %216 = vmatpush.msra.mxu2 %v185_v15  ;;  %279 = vmatpush.msra.mxu3 %v277_v42  ;;  %v271_v48 = vld [vmem:[#allocation11 + $0xc0] sm:$0xff]  ;;  %v272_v49 = vld [vmem:[#allocation11 + $0xc8] sm:$0xff]  ;;  %v269_v50 = vld [vmem:[#allocation11 + $0xb0] sm:$0xff] }
  0x2e   :  { %161 = vmatpush.msra.mxu0 %v146_v11  ;;  %197 = vmatpush.msra.mxu1 %v184_v18  ;;  %v270_v51 = vld [vmem:[#allocation11 + $0xb8] sm:$0xff]  ;;  %v267_v52 = vld [vmem:[#allocation11 + $0xa0] sm:$0xff]  ;;  %v268_v53 = vld [vmem:[#allocation11 + $0xa8] sm:$0xff] }
  0x2f   :  { %217 = vmatpush.msra.mxu2 %v184_v18  ;;  %280 = vmatpush.msra.mxu3 %v275_v44  ;;  %v265_v54 = vld [vmem:[#allocation11 + $0x90] sm:$0xff]  ;;  %v266_v55 = vld [vmem:[#allocation11 + $0x98] sm:$0xff]  ;;  %v263_v56 = vld [vmem:[#allocation11 + $0x80] sm:$0xff] }
  0x30   :  { %162 = vmatpush.msra.mxu0 %v145_v14  ;;  %198 = vmatpush.msra.mxu1 %v183_v21  ;;  %v264_v57 = vld [vmem:[#allocation11 + $0x88] sm:$0xff]  ;;  %v261_v58 = vld [vmem:[#allocation11 + $0x70] sm:$0xff]  ;;  %v262_v59 = vld [vmem:[#allocation11 + $0x78] sm:$0xff] }
  0x31   :  { %218 = vmatpush.msra.mxu2 %v183_v21  ;;  %281 = vmatpush.msra.mxu3 %v273_v46  ;;  %v259_v60 = vld [vmem:[#allocation11 + $0x60] sm:$0xff]  ;;  %v260_v61 = vld [vmem:[#allocation11 + $0x68] sm:$0xff]  ;;  %v257_v62 = vld [vmem:[#allocation11 + $0x50] sm:$0xff] }
  0x32   :  { %163 = vmatpush.msra.mxu0 %v144_v16  ;;  %199 = vmatpush.msra.mxu1 %v182_v25  ;;  %v258_v63 = vld [vmem:[#allocation11 + $0x58] sm:$0xff]  ;;  %v255_v0 = vld [vmem:[#allocation11 + $0x40] sm:$0xff]  ;;  %v256_v1 = vld [vmem:[#allocation11 + $0x48] sm:$0xff] }
  0x33   :  { %219 = vmatpush.msra.mxu2 %v182_v25  ;;  %282 = vmatpush.msra.mxu3 %v271_v48  ;;  %v253_v2 = vld [vmem:[#allocation11 + $0x30] sm:$0xff]  ;;  %v254_v3 = vld [vmem:[#allocation11 + $0x38] sm:$0xff]  ;;  %v251_v4 = vld [vmem:[#allocation11 + $0x20] sm:$0xff] }
  0x34   :  { %164 = vmatpush.msra.mxu0 %v143_v20  ;;  %200 = vmatpush.msra.mxu1 %v181_v27  ;;  %v252_v5 = vld [vmem:[#allocation11 + $0x28] sm:$0xff]  ;;  %v249_v6 = vld [vmem:[#allocation11 + $0x10] sm:$0xff]  ;;  %v250_v7 = vld [vmem:[#allocation11 + $0x18] sm:$0xff] }
  0x35   :  { %220 = vmatpush.msra.mxu2 %v181_v27  ;;  %283 = vmatpush.msra.mxu3 %v269_v50  ;;  %v247_v8 = vld [vmem:[#allocation11] sm:$0xff]  ;;  %v248_v9 = vld [vmem:[#allocation11 + $0x8] sm:$0xff]  ;;  %v336_v10 = vld [vmem:[#allocation13 + $0x78] sm:$0xff] }
  0x36   :  { %165 = vmatpush.msra.mxu0 %v142_v22  ;;  %201 = vmatpush.msra.mxu1 %v180_v30  ;;  %v335_v11 = vld [vmem:[#allocation13 + $0x70] sm:$0xff]  ;;  %v334_v14 = vld [vmem:[#allocation13 + $0x68] sm:$0xff]  ;;  %v333_v16 = vld [vmem:[#allocation13 + $0x60] sm:$0xff] }
  0x37   :  { %221 = vmatpush.msra.mxu2 %v180_v30  ;;  %284 = vmatpush.msra.mxu3 %v267_v52  ;;  %v332_v19 = vld [vmem:[#allocation13 + $0x58] sm:$0xff]  ;;  %v331_v21 = vld [vmem:[#allocation13 + $0x50] sm:$0xff]  ;;  %v330_v23 = vld [vmem:[#allocation13 + $0x48] sm:$0xff] }
  0x38   :  { %166 = vmatpush.msra.mxu0 %v141_v26  ;;  %202 = vmatpush.msra.mxu1 %v179_v33  ;;  %v329_v24 = vld [vmem:[#allocation13 + $0x40] sm:$0xff]  ;;  %v328_v25 = vld [vmem:[#allocation13 + $0x38] sm:$0xff]  ;;  %v327_v26 = vld [vmem:[#allocation13 + $0x30] sm:$0xff] }
  0x39   :  { %222 = vmatpush.msra.mxu2 %v179_v33  ;;  %285 = vmatpush.msra.mxu3 %v265_v54  ;;  %v322_v42 = vld [vmem:[#allocation13 + $0x8] sm:$0xff] }
  0x3a   :  { %167 = vmatpush.msra.mxu0 %v140_v28  ;;  %203 = vmatpush.msra.mxu1 %v178_v36 }
  0x3b   :  { %223 = vmatpush.msra.mxu2 %v178_v36  ;;  %286 = vmatpush.msra.mxu3 %v263_v56 }
  0x3c   :  { %168 = vmatpush.msra.mxu0 %v139_v32  ;;  %204 = vmatpush.msra.mxu1 %v177_v37 }
  0x3d   :  { %224 = vmatpush.msra.mxu2 %v177_v37  ;;  %287 = vmatpush.msra.mxu3 %v261_v58  ;;  %v326_v37 = vld [vmem:[#allocation13 + $0x28] sm:$0xff] }
  0x3e   :  { %169 = vmatpush.msra.mxu0 %v138_v34  ;;  %205 = vmatpush.msra.mxu1 %v176_v38 }
  0x3f   :  { %170 = vmatmul.f32.vlgmr.msra.gmra.mxu0 %v685_v35  ;;  %225 = vmatpush.msra.mxu2 %v176_v38  ;;  %v325_v38 = vld [vmem:[#allocation13 + $0x20] sm:$0xff] }
  0x40   :  { %206 = vmatpush.msra.mxu1 %v175_v39  ;;  %299 = vmatpush.msrb.mxu0 %v278_v43  ;;  %v321_v43 = vld [vmem:[#allocation13] sm:$0xff] }
  0x41   :  { %226 = vmatpush.msra.mxu2 %v175_v39  ;;  %288 = vmatpush.msra.mxu3 %v259_v60  ;;  %v324_v39 = vld [vmem:[#allocation13 + $0x18] sm:$0xff] }
  0x42   :  { %300 = vmatpush.msrb.mxu0 %v276_v45  ;;  %337 = vmatpush.msrb.mxu1 %v336_v10 }
  0x43   :  { %289 = vmatpush.msra.mxu3 %v257_v62 }
  0x44   :  { %301 = vmatpush.msrb.mxu0 %v274_v47  ;;  %338 = vmatpush.msrb.mxu1 %v335_v11  ;;  %v357_v47 = vperm.slane %v681_v13, 2 }
  0x45   :  { %290 = vmatpush.msra.mxu3 %v255_v0 }
  0x46   :  { %302 = vmatpush.msrb.mxu0 %v272_v49  ;;  %339 = vmatpush.msrb.mxu1 %v334_v14  ;;  %v358_v48 = vmul.f32 %v357_v47, %v685_v35  ;;  %v359_v49 = vperm.slane %v681_v13, 3 }
  0x47   :  { %291 = vmatpush.msra.mxu3 %v253_v2 }
  0x48   :  { %303 = vmatpush.msrb.mxu0 %v270_v51  ;;  %340 = vmatpush.msrb.mxu1 %v333_v16  ;;  %v360_v50 = vadd.f32 %v359_v49, %v358_v48 }
  0x49   :  { %292 = vmatpush.msra.mxu3 %v251_v4 }
  0x4a   :  { %304 = vmatpush.msrb.mxu0 %v268_v53  ;;  %341 = vmatpush.msrb.mxu1 %v332_v19 }
  0x4b   :  { %293 = vmatpush.msra.mxu3 %v249_v6 }
  0x4c   :  { %305 = vmatpush.msrb.mxu0 %v266_v55  ;;  %342 = vmatpush.msrb.mxu1 %v331_v21 }
  0x4d   :  { %294 = vmatpush.msra.mxu3 %v247_v8 }
  0x4e   :  { %306 = vmatpush.msrb.mxu0 %v264_v57  ;;  %343 = vmatpush.msrb.mxu1 %v330_v23 }
  0x50   :  { %307 = vmatpush.msrb.mxu0 %v262_v59  ;;  %344 = vmatpush.msrb.mxu1 %v329_v24 }
  0x52   :  { %308 = vmatpush.msrb.mxu0 %v260_v61  ;;  %345 = vmatpush.msrb.mxu1 %v328_v25 }
  0x54   :  { %309 = vmatpush.msrb.mxu0 %v258_v63  ;;  %346 = vmatpush.msrb.mxu1 %v327_v26 }
  0x56   :  { %310 = vmatpush.msrb.mxu0 %v256_v1  ;;  %347 = vmatpush.msrb.mxu1 %v326_v37 }
  0x58   :  { %311 = vmatpush.msrb.mxu0 %v254_v3  ;;  %348 = vmatpush.msrb.mxu1 %v325_v38 }
  0x5a   :  { %312 = vmatpush.msrb.mxu0 %v252_v5  ;;  %349 = vmatpush.msrb.mxu1 %v324_v39 }
  0x5c   :  { %313 = vmatpush.msrb.mxu0 %v250_v7 }
  0x5e   :  { %314 = vmatpush.msrb.mxu0 %v248_v9 }
  0xbc   :  { %v688_v40 = vpop.f32.mrf.mxu0 }
  0xbd   :  { %207 = vmatmul.f32.vlgmr.msra.gmra.mxu1 %v688_v40  ;;  %v174_v41 = vmul.f32 %v688_v40, %v688_v40 }
  0xbf   :  { %227 = vmatmul.f32.vlgmr.msra.gmra.mxu2 %v174_v41  ;;  %v323_v41 = vld [vmem:[#allocation13 + $0x10] sm:$0xff] }
  0xc0   :  { %350 = vmatpush.msrb.mxu1 %v323_v41 }
  0xc2   :  { %351 = vmatpush.msrb.mxu1 %v322_v42 }
  0xc4   :  { %352 = vmatpush.msrb.mxu1 %v321_v43 }
 0x13a   :  { %v208_v12 = vpop.f32.mrf.mxu1 }
 0x13b   :  { %v231_v15 = vmul.f32 %v208_v12, %v208_v12  ;;  %v234_v33 = vsub.f32 %v688_v40, %v208_v12 }
 0x142   :  { %v228_v17 = vpop.f32.mrf.mxu2 }
 0x143   :  { %v232_v18 = vsub.f32 %v228_v17, %v231_v15 }
 0x145   :  { %v233_v20 = vmax.f32 %v232_v18, 0.0 }
 0x147   :  { %v235_v22 = vadd.f32 1e-05, %v233_v20 }
 0x149   :  { %395 = vrsqrt.f32 %v235_v22  ;;  %vm242_vm1 = vweird.f32 %v235_v22 }
 0x14f   :  { %v396_v27 = vpop.eup %395 }
 0x150   :  { %v237_v28 = vmul.f32 %v396_v27, %v235_v22  ;;  %vm243_vm0 = vweird.f32 %v396_v27 }
 0x151   :  { %vm244_vm2 = vmor %vm242_vm1, %vm243_vm0 }
 0x152   :  { %v238_v29 = vmul.f32 %v396_v27, %v237_v28 }
 0x154   :  { %v239_v30 = vmul.f32 0.5, %v238_v29 }
 0x156   :  { %v240_v31 = vsub.f32 1.5, %v239_v30 }
 0x158   :  { %v241_v32 = vmul.f32 %v396_v27, %v240_v31 }
 0x15a   :  { %v245_v34 = vsel %vm244_vm2, %v396_v27, %v241_v32 }
 0x15b   :  { %v246_v36 = vmul.f32 %v245_v34, %v234_v33 }
 0x15d   :  { %295 = vmatmul.f32.vlgmr.msra.gmra.mxu3 %v246_v36  ;;  %315 = vmatmul.f32.vlgmr.msrb.gmra.mxu0 %v246_v36 }
 0x1da   :  { %v316_v40 = vpop.f32.mrf.mxu0 }
 0x1e0   :  { %v296_v44 = vpop.f32.mrf.mxu3 }
 0x1e1   :  { %v319_v45 = vmax.f32 %v296_v44, 0.0 }
 0x1e3   :  { %v320_v46 = vmul.f32 %v319_v45, %v316_v40 }
 0x1e5   :  { %353 = vmatmul.f32.vlgmr.msrb.gmra.mxu1 %v320_v46 }
 0x262   :  { %v354_v51 = vpop.f32.mrf.mxu1 }
 0x263   :  { %v361_v52 = vadd.f32 %v360_v50, %v354_v51 }
 0x265   :  { %362 = vst [vmem:[#allocation14] sm:$0xff] %v361_v52 }
 0x266   :  { %373 = dma.vmem_to_hbm [thread:$0]  %s369_s6, 128, %s371_s13, [#allocation4]  }
 0x267   :  { %597 = dma.done.wait [#allocation4], 128  }
 0x268   :  { %598 = vsyncadd [#allocation4], 4294967168 }
 0x269   :  { %378 = vsyncpa [#allocation3], 1 }
 0x26a   :  { %379 = vsyncpa [#allocation6], 1 }
 0x26b   :  { %380 = vsyncpa [#allocation9], 1 }
 0x26c   :  { %381 = vsyncpa [#allocation12], 1 }
 0x26d   :  { %382 = vsyncpa [#allocation4], 1 }

</bundles_post_ra>
